<compile_context>
chip_gen: v7x
topology: tpu7x:2x2x1
jax: 0.10.0
libtpu: 0.0.40
codegen_flags: <defaults>
</compile_context>

<pallas_src>
import functools

import jax
import jax.numpy as jnp
from jax.experimental import pallas as pl
from jax.experimental.pallas import tpu as pltpu


_LANES = 512               # preferred lane-dense width (multiple of 128)
_TARGET_BLOCK_ROWS = 2048  # 2048 x 512 f32 ~ 4 MiB / buffer -> per-step overhead < 5%
_ROW_GRAN = 32             # native-tile friendly for both f32 and int8 blocks


def _round_up(x, m):
    return ((x + m - 1) // m) * m


def _round_down(x, m):
    return (x // m) * m


def _num_tensorcores():
    """2 only on chips exposing two TensorCores per device (v7x); 1 on v5e/v6e."""
    try:
        kind = jax.devices()[0].device_kind.lower()
    except Exception:
        return 1
    return 2 if ("v7" in kind or "tpu7" in kind) else 1


# ---------------------------------------------------------------------------
# Forward head: row-wise cosine similarity between graph embeddings.
# ---------------------------------------------------------------------------
def _cosine_similarity_kernel(a_ref, b_ref, o_ref, *, eps):
    a = a_ref[...].astype(jnp.float32)
    b = b_ref[...].astype(jnp.float32)
    dot = jnp.sum(a * b, axis=-1, keepdims=True)
    na = jnp.sqrt(jnp.sum(a * a, axis=-1, keepdims=True))
    nb = jnp.sqrt(jnp.sum(b * b, axis=-1, keepdims=True))
    o_ref[...] = dot / (jnp.maximum(na, eps) * jnp.maximum(nb, eps))


def cosine_similarity_pairs(g1, g2, eps=1e-8):
    """F.cosine_similarity(g1, g2, dim=1) as a Pallas kernel. g1, g2: (B, D)."""
    assert g1.shape == g2.shape and g1.ndim == 2
    B, D = g1.shape
    blk = 1024 if (B % 8 == 0 and B > 1024) else B
    out = pl.pallas_call(
        functools.partial(_cosine_similarity_kernel, eps=float(eps)),
        out_shape=jax.ShapeDtypeStruct((B, 1), jnp.float32),
        grid_spec=pltpu.PrefetchScalarGridSpec(
            num_scalar_prefetch=0,
            grid=(pl.cdiv(B, blk),),
            in_specs=[pl.BlockSpec((blk, D), lambda i: (i, 0)),
                      pl.BlockSpec((blk, D), lambda i: (i, 0))],
            out_specs=pl.BlockSpec((blk, 1), lambda i: (i, 0)),
        ),
        compiler_params=pltpu.CompilerParams(dimension_semantics=("parallel",)),
    )(g1, g2)
    return out[:, 0]


# ---------------------------------------------------------------------------
# Contrastive objective over similarity scores.
# ---------------------------------------------------------------------------
def _contrastive_loss_kernel(sim_ref, lab_ref, out_ref, acc_ref, *, margin,
                             rows_valid, block_rows, acc_rows, blocks_per_core,
                             soft_labels, needs_mask):
    i = pl.program_id(1)

    @pl.when(i == 0)
    def _():
        acc_ref[...] = jnp.zeros_like(acc_ref)

    sim = sim_ref[...].astype(jnp.float32)          # bf16 streaming -> f32 compute
    d = 1.0 - sim
    pos = d * d
    r = jnp.maximum(sim - margin, 0.0)
    neg = 2.0 * (r * r)

    if soft_labels:
        lab = lab_ref[...]                          # already f32 (soft labels kept exact)
        per_elem = lab * pos + (1.0 - lab) * neg
    else:
        # Binary labels streamed as int8: select instead of weighted arithmetic
        # (cast is cheap unpack work hidden under HBM time).
        per_elem = jnp.where(lab_ref[...].astype(jnp.float32) > 0.5, pos, neg)

    if needs_mask:
        # Row mask for ragged / clamped trailing blocks. jnp.where is a select, so
        # garbage (even NaN/Inf) in out-of-bounds rows cannot leak into the sum.
        base_row = (pl.program_id(0) * blocks_per_core + i) * block_rows
        row_idx = jax.lax.broadcasted_iota(jnp.int32, per_elem.shape, 0) + base_row
        per_elem = jnp.where(row_idx < rows_valid, per_elem, 0.0)

    if block_rows == acc_rows:
        acc_ref[...] += per_elem
    else:
        # Reduce the block down to (8, cols) with pure VPU vreg adds before touching
        # the accumulator -> only 4 vregs of VMEM RMW per grid step.
        cols = per_elem.shape[-1]
        acc_ref[...] += per_elem.reshape(block_rows // acc_rows, acc_rows, cols).sum(axis=0)

    @pl.when(i == pl.num_programs(1) - 1)
    def _():
        # One small cross-sublane reduce per core; cross-lane sum happens in the wrapper.
        out_ref[...] = jnp.sum(acc_ref[...], axis=0, keepdims=True)


def contrastive_loss(sim, labels, margin=0.1, stream_sim_bf16=False):
    """Mean contrastive loss over similarity scores, computed in a Pallas TPU kernel."""
    assert sim.shape == labels.shape
    n_valid = int(sim.size)
    assert n_valid > 0

    soft_labels = bool(jnp.issubdtype(labels.dtype, jnp.floating))
    sim_flat = jnp.ravel(sim).astype(jnp.bfloat16 if stream_sim_bf16 else jnp.float32)
    lab_flat = jnp.ravel(labels).astype(jnp.float32 if soft_labels else jnp.int8)

    # Lane-dense 2-D view without materializing a padded copy: pick the widest lane
    # count that divides n_valid (ravel+reshape of a contiguous array is free).
    cols = next((c for c in (_LANES, 256, 128) if n_valid % c == 0), 0)
    if cols == 0:
        # Ragged tail: pad < 128 elements with (sim=1, label=1), which contributes
        # exactly zero to both loss terms for any margin.
        cols = 128
        pad = _round_up(n_valid, cols) - n_valid
        sim_flat = jnp.pad(sim_flat, (0, pad), constant_values=1.0)
        lab_flat = jnp.pad(lab_flat, (0, pad), constant_values=1)
    rows = sim_flat.size // cols
    sim2 = sim_flat.reshape(rows, cols)
    lab2 = lab_flat.reshape(rows, cols)

    # Core split only where it buys bandwidth (two TensorCores on v7x).
    ncores = _num_tensorcores()
    rows_per_core = pl.cdiv(rows, ncores)
    if rows >= _ROW_GRAN and rows_per_core >= _ROW_GRAN:
        block_rows = min(_TARGET_BLOCK_ROWS, _round_down(rows_per_core, _ROW_GRAN))
    else:
        block_rows = rows   # one block spanning all rows (block == full dim is legal)
        ncores = 1
    acc_rows = 8 if (block_rows % 8 == 0) else block_rows

    n_blocks = pl.cdiv(rows, block_rows)
    blocks_per_core = pl.cdiv(n_blocks, ncores)
    # In-kernel tail masking is only needed for a ragged last block or for cores whose
    # last logical block falls entirely past the end of the array.
    needs_mask = (n_blocks * block_rows != rows) or (ncores * blocks_per_core != n_blocks)

    if ncores * blocks_per_core == n_blocks:
        def in_map(p, i):
            return (p * blocks_per_core + i, 0)
    else:
        last = n_blocks - 1

        def in_map(p, i):
            # Clamp fully-OOB logical blocks onto the last real block; their rows are
            # masked out in-kernel via the logical (unclamped) row index.
            return (jnp.minimum(p * blocks_per_core + i, last), 0)

    sim_bytes = jnp.dtype(sim2.dtype).itemsize
    lab_bytes = jnp.dtype(lab2.dtype).itemsize
    est = (2 * block_rows * cols * (sim_bytes + lab_bytes)   # double-buffered inputs
           + acc_rows * cols * 4 + ncores * cols * 4 + (2 << 20))
    vmem_limit = int(min(max(est, 32 << 20), 56 << 20))      # stay below v7x 64 MiB/TC

    kernel = functools.partial(
        _contrastive_loss_kernel,
        margin=float(margin), rows_valid=rows, block_rows=block_rows,
        acc_rows=acc_rows, blocks_per_core=blocks_per_core,
        soft_labels=soft_labels, needs_mask=needs_mask)

    partials = pl.pallas_call(
        kernel,
        out_shape=jax.ShapeDtypeStruct((ncores, cols), jnp.float32),
        grid_spec=pltpu.PrefetchScalarGridSpec(
            num_scalar_prefetch=0,
            grid=(ncores, blocks_per_core),
            in_specs=[pl.BlockSpec((block_rows, cols), in_map),
                      pl.BlockSpec((block_rows, cols), in_map)],
            out_specs=pl.BlockSpec((1, cols), lambda p, i: (p, 0)),
            scratch_shapes=[pltpu.VMEM((acc_rows, cols), jnp.float32)],
        ),
        compiler_params=pltpu.CompilerParams(
            dimension_semantics=("parallel", "arbitrary"),
            vmem_limit_bytes=vmem_limit,
        ),
    )(sim2, lab2)

    return jnp.sum(partials) * (1.0 / float(n_valid))


def contrastive_loss_ref(sim, labels, margin=0.1):
    labels = labels.astype(jnp.float32)
    pos = labels * (1.0 - sim) ** 2
    neg = (1.0 - labels) * jnp.maximum(sim - margin, 0.0) ** 2 * 2.0
    return jnp.mean(pos + neg)


if __name__ == "__main__":
    key = jax.random.PRNGKey(0)
    k1, k2, k3, k4, k5, k6 = jax.random.split(key, 6)

    # --- forward-pass head: cosine similarity between GPS graph embeddings ---
    B, C = 32, 64   # 32 graph pairs, channels=64 (matches GPS(channels=64))
    g1 = jax.random.normal(k1, (B, C), jnp.float32)
    g2 = jax.random.normal(k2, (B, C), jnp.float32)
    cos = jax.block_until_ready(cosine_similarity_pairs(g1, g2))
    cos_ref = jnp.sum(g1 * g2, axis=1) / (
        jnp.maximum(jnp.linalg.norm(g1, axis=1), 1e-8)
        * jnp.maximum(jnp.linalg.norm(g2, axis=1), 1e-8))
    assert jnp.allclose(cos, cos_ref, rtol=1e-5, atol=1e-5), (cos, cos_ref)

    # --- contrastive objective over similarity scores (binary labels, aligned shape) ---
    sim = jax.random.uniform(k3, (32, 128), jnp.float32, minval=-1.0, maxval=1.0)
    labels = jax.random.bernoulli(k4, 0.5, (32, 128))
    loss = jax.block_until_ready(contrastive_loss(sim, labels, margin=0.1))
    ref = contrastive_loss_ref(sim, labels, margin=0.1)
    assert jnp.allclose(loss, ref, rtol=1e-5, atol=1e-6), (loss, ref)

    # --- larger case exercising multi-block grid + in-kernel partial-block masking ---
    sim_b = jax.random.uniform(k5, (100, 512), jnp.float32, minval=-1.0, maxval=1.0)
    lab_b = jax.random.bernoulli(k6, 0.5, (100, 512))
    loss_b = jax.block_until_ready(contrastive_loss(sim_b, lab_b, margin=0.1))
    ref_b = contrastive_loss_ref(sim_b, lab_b, margin=0.1)
    assert jnp.allclose(loss_b, ref_b, rtol=1e-4, atol=1e-6), (loss_b, ref_b)

    # --- ragged size with soft (float) labels: minimal-pad + weighted path ---
    sim_r = jax.random.uniform(k5, (7, 97), jnp.float32, minval=-1.0, maxval=1.0)
    lab_r = jax.random.uniform(k6, (7, 97), jnp.float32)
    loss_r = jax.block_until_ready(contrastive_loss(sim_r, lab_r, margin=0.1))
    ref_r = contrastive_loss_ref(sim_r, lab_r, margin=0.1)
    assert jnp.allclose(loss_r, ref_r, rtol=1e-5, atol=1e-6), (loss_r, ref_r)

    print("KERNEL_OK")
</pallas_src>

<mosaic_0001>
module attributes {stable_mosaic.version = 11 : i64} {
  func.func @_cosine_similarity_kernel(%arg0: i32, %arg1: memref<32x64xf32, #tpu.memory_space<vmem>>, %arg2: memref<32x64xf32, #tpu.memory_space<vmem>>, %arg3: memref<32x1xf32, #tpu.memory_space<vmem>>) attributes {dimension_semantics = [#tpu.dimension_semantics<parallel>], iteration_bounds = array<i64: 1>, scalar_prefetch = 0 : i64, scratch_operands = 0 : i64, tpu.core_type = #tpu.core_type<tc>, window_params = [{transform_indices = @transform_0, window_bounds = array<i64: 32, 64>}, {transform_indices = @transform_1, window_bounds = array<i64: 32, 64>}, {transform_indices = @transform_2, window_bounds = array<i64: 32, 1>}]} {
    %c0 = arith.constant 0 : index
    %c0_0 = arith.constant 0 : index
    %0 = vector.load %arg1[%c0, %c0_0] : memref<32x64xf32, #tpu.memory_space<vmem>>, vector<32x64xf32>
    %c0_1 = arith.constant 0 : index
    %c0_2 = arith.constant 0 : index
    %1 = vector.load %arg2[%c0_1, %c0_2] : memref<32x64xf32, #tpu.memory_space<vmem>>, vector<32x64xf32>
    %2 = arith.mulf %0, %1 : vector<32x64xf32>
    %cst = arith.constant dense<0.000000e+00> : vector<32xf32>
    %3 = vector.multi_reduction <add>, %2, %cst [1] : vector<32x64xf32> to vector<32xf32>
    %4 = vector.shape_cast %3 : vector<32xf32> to vector<32x1xf32>
    %5 = arith.mulf %0, %0 : vector<32x64xf32>
    %cst_3 = arith.constant dense<0.000000e+00> : vector<32xf32>
    %6 = vector.multi_reduction <add>, %5, %cst_3 [1] : vector<32x64xf32> to vector<32xf32>
    %7 = vector.shape_cast %6 : vector<32xf32> to vector<32x1xf32>
    %8 = math.sqrt %7 : vector<32x1xf32>
    %9 = arith.mulf %1, %1 : vector<32x64xf32>
    %cst_4 = arith.constant dense<0.000000e+00> : vector<32xf32>
    %10 = vector.multi_reduction <add>, %9, %cst_4 [1] : vector<32x64xf32> to vector<32xf32>
    %11 = vector.shape_cast %10 : vector<32xf32> to vector<32x1xf32>
    %12 = math.sqrt %11 : vector<32x1xf32>
    %cst_5 = arith.constant 9.99999993E-9 : f32
    %13 = vector.broadcast %cst_5 : f32 to vector<32x1xf32>
    %14 = arith.maximumf %8, %13 : vector<32x1xf32>
    %cst_6 = arith.constant 9.99999993E-9 : f32
    %15 = vector.broadcast %cst_6 : f32 to vector<32x1xf32>
    %16 = arith.maximumf %12, %15 : vector<32x1xf32>
    %17 = arith.mulf %14, %16 : vector<32x1xf32>
    %18 = arith.divf %4, %17 : vector<32x1xf32>
    %c0_7 = arith.constant 0 : index
    %c0_8 = arith.constant 0 : index
    %19 = vector.load %arg3[%c0_7, %c0_8] : memref<32x1xf32, #tpu.memory_space<vmem>>, vector<32x1xf32>
    tpu.vector_store %arg3[%c0_7, %c0_8], %18 {strides = array<i32>} : memref<32x1xf32, #tpu.memory_space<vmem>>, vector<32x1xf32>,
    return
  }
  func.func @transform_0(%arg0: i32) -> (i32, i32) {
    %c0_i32 = arith.constant 0 : i32
    %c0_i32_0 = arith.constant 0 : i32
    return %arg0, %c0_i32 : i32, i32
  }
  func.func @transform_1(%arg0: i32) -> (i32, i32) {
    %c0_i32 = arith.constant 0 : i32
    %c0_i32_0 = arith.constant 0 : i32
    return %arg0, %c0_i32 : i32, i32
  }
  func.func @transform_2(%arg0: i32) -> (i32, i32) {
    %c0_i32 = arith.constant 0 : i32
    %c0_i32_0 = arith.constant 0 : i32
    return %arg0, %c0_i32 : i32, i32
  }
}

</mosaic_0001>

<bundles_post_ra>
// kernel: tpu_custom_call.1
= control target key start
LH: loop header
LB: loop body
LE: loop exit
PB: predicated region body
PF: predicated region fallthrough
CT: control target
= control target key end

     0   :  { %7 = vsyncpa [#allocation3], 0  ;;  %s365_s0 = inlined_call_operand.hbm [shape: f32[32,64], index: 0, kind: input, shape index: {}]   ;;  %s366_s1 = inlined_call_operand.hbm [shape: f32[32,64], index: 1, kind: input, shape index: {}]   ;;  %s367_s2 = inlined_call_operand.vmem [shape: f32[32,1], index: 2, kind: output, shape index: {}]  }
   0x1   :  { %8 = vsyncpa [#allocation5], 0  ;;  %s259_s9 = smov [#allocation2]   ;;  %s211_s13 = scalar_lea.hbm %s365_s0, 512 }
   0x2   :  { %s14_s10 = sshll.u32 %s259_s9, 4  ;;  %p212_p0 = scmp.ne.s32.totalorder %s365_s0, %s211_s13  ;;  %s15_s10 = int_to_ptr.vmem [resolvable:$true] %s14_s10 }
   0x3   :  { %p215_p1 = scmp.lt.u32.totalorder %s211_s13, %s365_s0 }
   0x5   :  { %p217_p2 = pnand %p215_p1, %p212_p0 }
   0x7   :  { %220 = shalt.err (!%p217_p2)
}
   0x8   :  { %s221_s18 = scalar_lea.vmem %s15_s10, 512  ;;  %p226_p4 = scmp.lt.s32.totalorder %s15_s10, %s15_s10 }
   0x9   :  { %p222_p3 = scmp.ne.s32.totalorder %s15_s10, %s221_s18  ;;  %p227_p5 = scmp.lt.s32.totalorder %s221_s18, %s221_s18 }
   0xb   :  { %p228_p6 = por %p227_p5, %p226_p4 }
   0xd   :  { %p229_p7 = pnand %p228_p6, %p222_p3 }
   0xf   :  { %232 = shalt.err (!%p229_p7)
}
  0x10   :  { %s260_s19 = smov 128   ;;  %s261_s20 = smov 8  }
  0x11   :  { %20 = dma.hbm_to_vmem [thread:$0]  %s365_s0, 512, %s15_s10, [#allocation3], %s260_s19, %s260_s19, %s261_s20  }
  0x12   :  { %s262_s23 = smov [#allocation4]   ;;  %s233_s27 = scalar_lea.hbm %s366_s1, 512 }
  0x13   :  { %s26_s24 = sshll.u32 %s262_s23, 4  ;;  %p234_p8 = scmp.ne.s32.totalorder %s366_s1, %s233_s27  ;;  %s27_s24 = int_to_ptr.vmem [resolvable:$true] %s26_s24 }
  0x14   :  { %p237_p9 = scmp.lt.u32.totalorder %s233_s27, %s366_s1 }
  0x16   :  { %p239_p10 = pnand %p237_p9, %p234_p8 }
  0x18   :  { %242 = shalt.err (!%p239_p10)
}
  0x19   :  { %s243_s4 = scalar_lea.vmem %s27_s24, 512  ;;  %p248_p12 = scmp.lt.s32.totalorder %s27_s24, %s27_s24 }
  0x1a   :  { %p244_p11 = scmp.ne.s32.totalorder %s27_s24, %s243_s4  ;;  %p249_p13 = scmp.lt.s32.totalorder %s243_s4, %s243_s4 }
  0x1c   :  { %p250_p0 = por %p249_p13, %p248_p12 }
  0x1e   :  { %p251_p1 = pnand %p250_p0, %p244_p11 }
  0x20   :  { %254 = shalt.err (!%p251_p1)
}
  0x21   :  { %32 = dma.hbm_to_vmem [thread:$0]  %s366_s1, 512, %s27_s24, [#allocation5], %s260_s19, %s260_s19, %s261_s20  }
  0x22   :  { %255 = dma.done.wait [#allocation3], 512  }
  0x23   :  { %256 = vsyncadd [#allocation3], 4294966784 }
  0x24   :  { %257 = dma.done.wait [#allocation5], 512  }
  0x25   :  { %258 = vsyncadd [#allocation5], 4294966784  ;;  %v41_v0 = vld [vmem:[#allocation2 + $0x10] sm:$0xff]  ;;  %vm51_vm0 = vcmask 523264   ;;  %v39_v1 = vld [vmem:[#allocation2] sm:$0xff] }
  0x26   :  { %v42_v2 = vld [vmem:[#allocation2 + $0x18] sm:$0xff]  ;;  %v66_v3 = vmul.f32 %v41_v0, %v41_v0  ;;  %v64_v4 = vmul.f32 %v39_v1, %v39_v1  ;;  %v40_v6 = vld [vmem:[#allocation2 + $0x8] sm:$0xff]  ;;  %v43_v9 = vld [vmem:[#allocation4] sm:$0xff] }
  0x27   :  { %v67_v5 = vmul.f32 %v42_v2, %v42_v2  ;;  %v65_v7 = vmul.f32 %v40_v6, %v40_v6  ;;  %v44_v8 = vld [vmem:[#allocation4 + $0x8] sm:$0xff]  ;;  %v108_v15 = vmul.f32 %v43_v9, %v43_v9  ;;  %v46_v16 = vld [vmem:[#allocation4 + $0x18] sm:$0xff]  ;;  %v45_v17 = vld [vmem:[#allocation4 + $0x10] sm:$0xff]  ;;  %v47_v25 = vmul.f32 %v43_v9, %v39_v1 }
  0x28   :  { %v74_v10 = vsel %vm51_vm0, %v66_v3, 0.0  ;;  %v68_v11 = vsel %vm51_vm0, %v64_v4, 0.0  ;;  %v109_v14 = vmul.f32 %v44_v8, %v44_v8  ;;  %v111_v20 = vmul.f32 %v46_v16, %v46_v16 }
  0x29   :  { %75 = vadd.xlane.f32.xlu1 %v74_v10  ;;  %69 = vadd.xlane.f32.xlu0 %v68_v11  ;;  %v77_v12 = vsel %vm51_vm0, %v67_v5, 0.0  ;;  %v71_v13 = vsel %vm51_vm0, %v65_v7, 0.0  ;;  %v112_v19 = vsel %vm51_vm0, %v108_v15, 0.0  ;;  %v110_v21 = vmul.f32 %v45_v17, %v45_v17 }
  0x2a   :  { %v115_v18 = vsel %vm51_vm0, %v109_v14, 0.0  ;;  %v121_v22 = vsel %vm51_vm0, %v111_v20, 0.0  ;;  %v48_v24 = vmul.f32 %v44_v8, %v40_v6  ;;  %v52_v27 = vsel %vm51_vm0, %v47_v25, 0.0 }
  0x2b   :  { %v118_v23 = vsel %vm51_vm0, %v110_v21, 0.0  ;;  %v50_v28 = vmul.f32 %v46_v16, %v42_v2  ;;  %v49_v29 = vmul.f32 %v45_v17, %v41_v0 }
  0x2c   :  { %v55_v26 = vsel %vm51_vm0, %v48_v24, 0.0 }
  0x2d   :  { %78 = vadd.xlane.f32.xlu1 %v77_v12  ;;  %72 = vadd.xlane.f32.xlu0 %v71_v13  ;;  %v61_v30 = vsel %vm51_vm0, %v50_v28, 0.0  ;;  %v58_v31 = vsel %vm51_vm0, %v49_v29, 0.0 }
  0x31   :  { %116 = vadd.xlane.f32.xlu1 %v115_v18  ;;  %113 = vadd.xlane.f32.xlu0 %v112_v19 }
  0x35   :  { %122 = vadd.xlane.f32.xlu1 %v121_v22  ;;  %119 = vadd.xlane.f32.xlu0 %v118_v23 }
  0x39   :  { %56 = vadd.xlane.f32.xlu1 %v55_v26  ;;  %53 = vadd.xlane.f32.xlu0 %v52_v27 }
  0x3d   :  { %62 = vadd.xlane.f32.xlu1 %v61_v30  ;;  %59 = vadd.xlane.f32.xlu0 %v58_v31 }
  0xb6   :  { %v314_v32 = vpop.xlane.xlu1 %75  ;;  %v70_v33 = vpop.xlane.xlu0 %69 }
  0xb7   :  { %187 = vrsqrt.f32 %v70_v33  ;;  %vm96_vm1 = vcmp.eq.f32.partialorder %v314_v32, inf  ;;  %v99_v43 = vand.u32 2147483648, %v314_v32  ;;  %vm82_vm2 = vcmp.eq.f32.partialorder %v70_v33, inf }
  0xb8   :  { %189 = vrsqrt.f32 %v314_v32  ;;  %vm84_vm3 = vcmp.eq.f32.partialorder %v70_v33, 0.0  ;;  %v85_v46 = vand.u32 2147483648, %v70_v33  ;;  %vm98_vm6 = vcmp.eq.f32.partialorder %v314_v32, 0.0 }
  0xba   :  { %v317_v34 = vpop.xlane.xlu1 %78  ;;  %v73_v35 = vpop.xlane.xlu0 %72 }
  0xbb   :  { %191 = vrsqrt.f32 %v317_v34  ;;  %vm103_vm4 = vcmp.eq.f32.partialorder %v317_v34, inf  ;;  %vm105_vm5 = vcmp.eq.f32.partialorder %v317_v34, 0.0  ;;  %v106_v47 = vand.u32 2147483648, %v317_v34 }
  0xbc   :  { %193 = vrsqrt.f32 %v73_v35  ;;  %vm89_vm7 = vcmp.eq.f32.partialorder %v73_v35, inf  ;;  %vm91_vm8 = vcmp.eq.f32.partialorder %v73_v35, 0.0  ;;  %v92_v51 = vand.u32 2147483648, %v73_v35 }
  0xbe   :  { %v117_v36 = vpop.xlane.xlu1 %116  ;;  %v114_v37 = vpop.xlane.xlu0 %113 }
  0xbf   :  { %195 = vrsqrt.f32 %v117_v36  ;;  %vm133_vm9 = vcmp.eq.f32.partialorder %v117_v36, inf  ;;  %vm135_vm10 = vcmp.eq.f32.partialorder %v117_v36, 0.0  ;;  %v136_v55 = vand.u32 2147483648, %v117_v36 }
  0xc0   :  { %197 = vrsqrt.f32 %v114_v37  ;;  %vm126_vm11 = vcmp.eq.f32.partialorder %v114_v37, inf  ;;  %vm128_vm12 = vcmp.eq.f32.partialorder %v114_v37, 0.0  ;;  %v129_v58 = vand.u32 2147483648, %v114_v37 }
  0xc1   :  { %v188_v38 = vpop.eup %187 }
  0xc2   :  { %v123_v39 = vpop.xlane.xlu1 %122  ;;  %v320_v40 = vpop.xlane.xlu0 %119  ;;  %v81_v44 = vmul.f32 %v188_v38, %v70_v33 }
  0xc3   :  { %199 = vrsqrt.f32 %v123_v39  ;;  %v190_v41 = vpop.eup %189  ;;  %vm147_vm13 = vcmp.eq.f32.partialorder %v123_v39, inf  ;;  %vm149_vm14 = vcmp.eq.f32.partialorder %v123_v39, 0.0  ;;  %v150_v4 = vand.u32 2147483648, %v123_v39 }
  0xc4   :  { %201 = vrsqrt.f32 %v320_v40  ;;  %v95_v49 = vmul.f32 %v190_v41, %v314_v32  ;;  %v83_v53 = vsel %vm82_vm2, %v70_v33, %v81_v44  ;;  %vm140_vm15 = vcmp.eq.f32.partialorder %v320_v40, inf }
  0xc5   :  { %v192_v42 = vpop.eup %191  ;;  %v86_v62 = vsel %vm84_vm3, %v85_v46, %v83_v53  ;;  %v143_v16 = vand.u32 2147483648, %v320_v40  ;;  %vm142_vm0 = vcmp.eq.f32.partialorder %v320_v40, 0.0 }
  0xc6   :  { %v194_v45 = vpop.eup %193  ;;  %v102_v50 = vmul.f32 %v192_v42, %v317_v34  ;;  %v97_v61 = vsel %vm96_vm1, %v314_v32, %v95_v49  ;;  %v152_v12 = vmax.f32 %v86_v62, 1e-08  ;;  %v57_v28 = vpop.xlane.xlu1 %56  ;;  %vm172_vm1 = vcmask 7168  }
  0xc7   :  { %v88_v48 = vmul.f32 %v194_v45, %v73_v35  ;;  %v100_v14 = vsel %vm98_vm6, %v99_v43, %v97_v61  ;;  %v54_v29 = vpop.xlane.xlu0 %53 }
  0xc8   :  { %v104_v63 = vsel %vm103_vm4, %v317_v34, %v102_v50  ;;  %v154_v24 = vmax.f32 %v100_v14, 1e-08 }
  0xc9   :  { %v196_v52 = vpop.eup %195  ;;  %v90_v54 = vsel %vm89_vm7, %v73_v35, %v88_v48  ;;  %v107_v10 = vsel %vm105_vm5, %v106_v47, %v104_v63 }
  0xca   :  { %v198_v56 = vpop.eup %197  ;;  %v132_v57 = vmul.f32 %v196_v52, %v117_v36  ;;  %v93_v59 = vsel %vm91_vm8, %v92_v51, %v90_v54  ;;  %v155_v22 = vmax.f32 %v107_v10, 1e-08  ;;  %v63_v34 = vpop.xlane.xlu1 %62 }
  0xcb   :  { %v125_v60 = vmul.f32 %v198_v56, %v114_v37  ;;  %v153_v9 = vmax.f32 %v93_v59, 1e-08  ;;  %v60_v35 = vpop.xlane.xlu0 %59 }
  0xcc   :  { %v134_v0 = vsel %vm133_vm9, %v117_v36, %v132_v57 }
  0xcd   :  { %v200_v1 = vpop.eup %199  ;;  %v137_v2 = vsel %vm135_vm10, %v136_v55, %v134_v0  ;;  %v127_v3 = vsel %vm126_vm11, %v114_v37, %v125_v60 }
  0xce   :  { %v202_v5 = vpop.eup %201  ;;  %v130_v6 = vsel %vm128_vm12, %v129_v58, %v127_v3  ;;  %v146_v7 = vmul.f32 %v200_v1, %v123_v39  ;;  %v157_v8 = vmax.f32 %v137_v2, 1e-08 }
  0xcf   :  { %v139_v11 = vmul.f32 %v202_v5, %v320_v40  ;;  %v156_v13 = vmax.f32 %v130_v6, 1e-08 }
  0xd0   :  { %v148_v15 = vsel %vm147_vm13, %v123_v39, %v146_v7  ;;  %v161_v17 = vmul.f32 %v157_v8, %v153_v9 }
  0xd1   :  { %v151_v18 = vsel %vm149_vm14, %v150_v4, %v148_v15  ;;  %v141_v19 = vsel %vm140_vm15, %v320_v40, %v139_v11  ;;  %v160_v20 = vmul.f32 %v156_v13, %v152_v12 }
  0xd2   :  { %v144_v21 = vsel %vm142_vm0, %v143_v16, %v141_v19  ;;  %203 = vrcp.f32 %v161_v17  ;;  %v159_v23 = vmax.f32 %v151_v18, 1e-08 }
  0xd3   :  { %205 = vrcp.f32 %v160_v20  ;;  %v158_v25 = vmax.f32 %v144_v21, 1e-08 }
  0xd4   :  { %v163_v26 = vmul.f32 %v159_v23, %v155_v22 }
  0xd5   :  { %v162_v27 = vmul.f32 %v158_v25, %v154_v24 }
  0xd6   :  { %207 = vrcp.f32 %v163_v26 }
  0xd7   :  { %209 = vrcp.f32 %v162_v27 }
  0xdc   :  { %v204_v30 = vpop.eup %203 }
  0xdd   :  { %v206_v31 = vpop.eup %205  ;;  %v167_v32 = vmul.f32 %v204_v30, %v57_v28 }
  0xde   :  { %v165_v33 = vmul.f32 %v206_v31, %v54_v29 }
  0xdf   :  { %174 = vst.msk [vmem:[%s367_s2 + $0x8] sm:$0xff] %vm172_vm1, %v167_v32 }
  0xe0   :  { %v208_v36 = vpop.eup %207  ;;  %173 = vst.msk [vmem:[%s367_s2] sm:$0xff] %vm172_vm1, %v165_v33 }
  0xe1   :  { %v210_v37 = vpop.eup %209  ;;  %v171_v38 = vmul.f32 %v208_v36, %v63_v34 }
  0xe2   :  { %v169_v39 = vmul.f32 %v210_v37, %v60_v35 }
  0xe3   :  { %176 = vst.msk [vmem:[%s367_s2 + $0x18] sm:$0xff] %vm172_vm1, %v171_v38 }
  0xe4   :  { %175 = vst.msk [vmem:[%s367_s2 + $0x10] sm:$0xff] %vm172_vm1, %v169_v39 }
  0xe5   :  { %181 = vsyncpa [#allocation3], 1 }
  0xe6   :  { %182 = vsyncpa [#allocation5], 1 }

</bundles_post_ra>
